<compile_context>
chip_gen: v7x
topology: tpu7x:2x2x1
jax: 0.10.0
libtpu: 0.0.40
codegen_flags: <defaults>
</compile_context>

<pallas_src>
import functools

import jax
import jax.numpy as jnp
from jax import lax
from jax.experimental import pallas as pl
from jax.experimental.pallas import tpu as pltpu

IN_F, H1, H2, OUT_F = 18, 12, 6, 3

# VMEM bytes per batch row for the pipelined tiles: the (tb, 18) x tile and the
# (tb, 3) out tile each pad to 128 lanes (512 B/row) and are double-buffered by
# the Pallas pipeline -> 4 * 512 B/row.
_PIPELINED_VMEM_BYTES_PER_ROW = 4 * 512
# Chunk-bounded intermediates, resident weights, compiler scratch.
_VMEM_HEADROOM_BYTES = 16 << 20


def _vmem_capacity_bytes():
    try:
        return int(pltpu.get_tpu_info().vmem_capacity_bytes)
    except Exception:
        return 64 << 20  # v7x per-TensorCore capacity = most conservative


def _round_up(x, m):
    return ((x + m - 1) // m) * m


def _auto_block_b(B):
    """Pick the batch tile.

    The kernel is bound by per-grid-step overhead / HBM bandwidth (~84 B of
    real traffic per row), so we want the biggest tile the VMEM budget allows,
    while still giving >= ~8 grid steps for large B so v7x's two TensorCores
    each pipeline several tiles.
    """
    cap = _vmem_capacity_bytes()
    max_tb = (cap // 2) // _PIPELINED_VMEM_BYTES_PER_ROW  # ~32K rows v5e/v6e, ~16K v7x
    max_tb = max(1024, (max_tb // 512) * 512)
    if B <= 1024:
        return B  # single full-extent tile (always a legal block shape)
    tb = _round_up(pl.cdiv(B, 8), 512)
    return int(min(max(tb, 1024), max_tb))


def _pick_chunk(tb, chunk_b):
    """Largest divisor of tb that is <= chunk_b, so the h1/h2/logits
    intermediates stay a few hundred KiB instead of scaling with tb."""
    if tb <= chunk_b:
        return tb
    for c in (chunk_b, 512, 256, 128, 64, 32, 16, 8):
        if c <= chunk_b and tb % c == 0:
            return c
    return tb


def _scfcst_kernel(x_ref, w1_ref, b1_ref, w2_ref, b2_ref, w3_ref, b3_ref,
                   o_ref, *, chunk, n_chunks):
    # Weights / biases are VMEM-resident (constant index_map); hoist the loads
    # out of the chunk loop.
    w1, b1 = w1_ref[...], b1_ref[...]
    w2, b2 = w2_ref[...], b2_ref[...]
    w3, b3 = w3_ref[...], b3_ref[...]

    def compute(rows):
        x = x_ref[rows, :]                                             # [c, 18]

        h1 = jnp.dot(x, w1, preferred_element_type=jnp.float32) + b1
        h1 = jnp.maximum(h1, 0.0)                                      # [c, 12]

        h2 = jnp.dot(h1, w2, preferred_element_type=jnp.float32) + b2
        h2 = jnp.maximum(h2, 0.0)                                      # [c, 6]

        logits = jnp.dot(h2, w3, preferred_element_type=jnp.float32) + b3  # [c, 3]

        # log_softmax over the feature axis (PyTorch dim=1).  Rows are
        # independent, so padded rows of a partial final grid tile cannot
        # contaminate valid rows.
        m = jnp.max(logits, axis=-1, keepdims=True)
        shifted = logits - m
        lse = jnp.log(jnp.sum(jnp.exp(shifted), axis=-1, keepdims=True))
        o_ref[rows, :] = (shifted - lse).astype(o_ref.dtype)

    if n_chunks == 1:
        compute(slice(None))
    else:
        def body(c, carry):
            r0 = pl.multiple_of(c * chunk, chunk)
            compute(pl.ds(r0, chunk))
            return carry

        lax.fori_loop(0, n_chunks, body, None)


@functools.partial(jax.jit, static_argnames=("block_b", "chunk_b"))
def scfcst_forward(x, w1, b1, w2, b2, w3, b3, *, block_b=None, chunk_b=512):
    B = x.shape[0]

    if block_b is None:
        tb = _auto_block_b(B)
    elif B <= block_b:
        tb = B  # full-extent block: always legal regardless of divisibility
    else:
        assert block_b % 8 == 0, "block_b must be a multiple of 8"
        tb = block_b

    chunk = _pick_chunk(tb, chunk_b)
    n_chunks = tb // chunk
    grid = (pl.cdiv(B, tb),)

    cap = _vmem_capacity_bytes()
    vmem_limit = int(min(0.75 * cap,
                         tb * _PIPELINED_VMEM_BYTES_PER_ROW + _VMEM_HEADROOM_BYTES))

    # Weights/biases: constant block index -> fetched once, VMEM-resident.
    def resident(shape):
        return pl.BlockSpec(shape, lambda *_: (0,) * len(shape))

    kernel = functools.partial(_scfcst_kernel, chunk=chunk, n_chunks=n_chunks)

    return pl.pallas_call(
        kernel,
        out_shape=jax.ShapeDtypeStruct((B, OUT_F), jnp.float32),
        grid=grid,
        in_specs=[
            pl.BlockSpec((tb, IN_F), lambda i: (i, 0)),   # x: batch-tiled
            resident(w1.shape), resident(b1.shape),
            resident(w2.shape), resident(b2.shape),
            resident(w3.shape), resident(b3.shape),
        ],
        out_specs=pl.BlockSpec((tb, OUT_F), lambda i: (i, 0)),
        compiler_params=pltpu.CompilerParams(
            # Batch tiles are independent -> shard across TCs on v7x megacore.
            dimension_semantics=("parallel",),
            vmem_limit_bytes=vmem_limit,
        ),
    )(x, w1, b1, w2, b2, w3, b3)


def init_params(key):
    """Deterministic init mimicking PyTorch nn.Linear default (U(+-1/sqrt(fan_in))).

    Weights are stored transposed relative to PyTorch ([in, out]) so the kernel
    computes y = x @ W + b directly.  Biases are [1, out] for clean VMEM layout.
    """
    dims = [(IN_F, H1), (H1, H2), (H2, OUT_F)]
    params = []
    for i, (fan_in, fan_out) in enumerate(dims):
        kw, kb = jax.random.split(jax.random.fold_in(key, i))
        bound = 1.0 / jnp.sqrt(fan_in)
        w = jax.random.uniform(kw, (fan_in, fan_out), jnp.float32, -bound, bound)
        b = jax.random.uniform(kb, (1, fan_out), jnp.float32, -bound, bound)
        params += [w, b]
    return params


def reference_forward(x, w1, b1, w2, b2, w3, b3):
    h1 = jnp.maximum(x @ w1 + b1, 0.0)
    h2 = jnp.maximum(h1 @ w2 + b2, 0.0)
    logits = h2 @ w3 + b3
    return jax.nn.log_softmax(logits, axis=-1)


if __name__ == "__main__":
    key = jax.random.PRNGKey(0)
    kx, kp = jax.random.split(key)

    B = 256
    x = jax.random.normal(kx, (B, IN_F), jnp.float32)
    params = init_params(kp)

    ref = reference_forward(x, *params)

    # Default (auto-tiled) path: single full-extent tile at this small B.
    out = jax.block_until_ready(scfcst_forward(x, *params))
    assert out.shape == (B, OUT_F)
    assert jnp.allclose(out, ref, atol=1e-5, rtol=1e-5)

    # Also exercise the multi-tile grid (grid=(2,)) and the in-kernel chunk
    # loop (4 chunks/tile) at small shapes to validate both code paths.
    out2 = jax.block_until_ready(scfcst_forward(x, *params, block_b=128, chunk_b=32))
    assert jnp.allclose(out2, ref, atol=1e-5, rtol=1e-5)

    print("KERNEL_OK")
</pallas_src>

<mosaic_0001>
module attributes {stable_mosaic.version = 11 : i64} {
  func.func @_scfcst_kernel(%arg0: i32, %arg1: memref<256x18xf32, #tpu.memory_space<vmem>>, %arg2: memref<18x12xf32, #tpu.memory_space<vmem>>, %arg3: memref<1x12xf32, #tpu.memory_space<vmem>>, %arg4: memref<12x6xf32, #tpu.memory_space<vmem>>, %arg5: memref<1x6xf32, #tpu.memory_space<vmem>>, %arg6: memref<6x3xf32, #tpu.memory_space<vmem>>, %arg7: memref<1x3xf32, #tpu.memory_space<vmem>>, %arg8: memref<256x3xf32, #tpu.memory_space<vmem>>) attributes {dimension_semantics = [#tpu.dimension_semantics<parallel>], iteration_bounds = array<i64: 1>, scalar_prefetch = 0 : i64, scratch_operands = 0 : i64, tpu.core_type = #tpu.core_type<tc>, window_params = [{transform_indices = @transform_0, window_bounds = array<i64: 256, 18>}, {pipeline_mode = #tpu.pipeline_mode<synchronous>, transform_indices = @transform_1, window_bounds = array<i64: 18, 12>}, {pipeline_mode = #tpu.pipeline_mode<synchronous>, transform_indices = @transform_2, window_bounds = array<i64: 1, 12>}, {pipeline_mode = #tpu.pipeline_mode<synchronous>, transform_indices = @transform_3, window_bounds = array<i64: 12, 6>}, {pipeline_mode = #tpu.pipeline_mode<synchronous>, transform_indices = @transform_4, window_bounds = array<i64: 1, 6>}, {pipeline_mode = #tpu.pipeline_mode<synchronous>, transform_indices = @transform_5, window_bounds = array<i64: 6, 3>}, {pipeline_mode = #tpu.pipeline_mode<synchronous>, transform_indices = @transform_6, window_bounds = array<i64: 1, 3>}, {transform_indices = @transform_7, window_bounds = array<i64: 256, 3>}]} {
    %c0 = arith.constant 0 : index
    %c0_0 = arith.constant 0 : index
    %0 = vector.load %arg2[%c0, %c0_0] : memref<18x12xf32, #tpu.memory_space<vmem>>, vector<18x12xf32>
    %c0_1 = arith.constant 0 : index
    %c0_2 = arith.constant 0 : index
    %1 = vector.load %arg3[%c0_1, %c0_2] : memref<1x12xf32, #tpu.memory_space<vmem>>, vector<1x12xf32>
    %c0_3 = arith.constant 0 : index
    %c0_4 = arith.constant 0 : index
    %2 = vector.load %arg4[%c0_3, %c0_4] : memref<12x6xf32, #tpu.memory_space<vmem>>, vector<12x6xf32>
    %c0_5 = arith.constant 0 : index
    %c0_6 = arith.constant 0 : index
    %3 = vector.load %arg5[%c0_5, %c0_6] : memref<1x6xf32, #tpu.memory_space<vmem>>, vector<1x6xf32>
    %c0_7 = arith.constant 0 : index
    %c0_8 = arith.constant 0 : index
    %4 = vector.load %arg6[%c0_7, %c0_8] : memref<6x3xf32, #tpu.memory_space<vmem>>, vector<6x3xf32>
    %c0_9 = arith.constant 0 : index
    %c0_10 = arith.constant 0 : index
    %5 = vector.load %arg7[%c0_9, %c0_10] : memref<1x3xf32, #tpu.memory_space<vmem>>, vector<1x3xf32>
    %c0_11 = arith.constant 0 : index
    %c0_12 = arith.constant 0 : index
    %6 = vector.load %arg1[%c0_11, %c0_12] : memref<256x18xf32, #tpu.memory_space<vmem>>, vector<256x18xf32>
    %cst = arith.constant dense<0.000000e+00> : vector<256x12xf32>
    %7 = tpu.matmul %6, %0, %cst {dimension_numbers = #tpu.dot_dimension_numbers<[1], [0], [0], [1], [0, 0, 1, 1], [], []>} : vector<256x18xf32>, vector<18x12xf32>, vector<256x12xf32> -> vector<256x12xf32>
    %8 = vector.broadcast %1 : vector<1x12xf32> to vector<256x12xf32>
    %9 = arith.addf %7, %8 : vector<256x12xf32>
    %cst_13 = arith.constant 0.000000e+00 : f32
    %10 = vector.broadcast %cst_13 : f32 to vector<256x12xf32>
    %11 = arith.maximumf %9, %10 : vector<256x12xf32>
    %cst_14 = arith.constant dense<0.000000e+00> : vector<256x6xf32>
    %12 = tpu.matmul %11, %2, %cst_14 {dimension_numbers = #tpu.dot_dimension_numbers<[1], [0], [0], [1], [0, 0, 1, 1], [], []>} : vector<256x12xf32>, vector<12x6xf32>, vector<256x6xf32> -> vector<256x6xf32>
    %13 = vector.broadcast %3 : vector<1x6xf32> to vector<256x6xf32>
    %14 = arith.addf %12, %13 : vector<256x6xf32>
    %cst_15 = arith.constant 0.000000e+00 : f32
    %15 = vector.broadcast %cst_15 : f32 to vector<256x6xf32>
    %16 = arith.maximumf %14, %15 : vector<256x6xf32>
    %cst_16 = arith.constant dense<0.000000e+00> : vector<256x3xf32>
    %17 = tpu.matmul %16, %4, %cst_16 {dimension_numbers = #tpu.dot_dimension_numbers<[1], [0], [0], [1], [0, 0, 1, 1], [], []>} : vector<256x6xf32>, vector<6x3xf32>, vector<256x3xf32> -> vector<256x3xf32>
    %18 = vector.broadcast %5 : vector<1x3xf32> to vector<256x3xf32>
    %19 = arith.addf %17, %18 : vector<256x3xf32>
    %cst_17 = arith.constant dense<0xFF800000> : vector<256xf32>
    %20 = vector.multi_reduction <maximumf>, %19, %cst_17 [1] : vector<256x3xf32> to vector<256xf32>
    %21 = vector.shape_cast %20 : vector<256xf32> to vector<256x1xf32>
    %22 = vector.broadcast %21 : vector<256x1xf32> to vector<256x3xf32>
    %23 = arith.subf %19, %22 : vector<256x3xf32>
    %24 = math.exp %23 : vector<256x3xf32>
    %cst_18 = arith.constant dense<0.000000e+00> : vector<256xf32>
    %25 = vector.multi_reduction <add>, %24, %cst_18 [1] : vector<256x3xf32> to vector<256xf32>
    %26 = vector.shape_cast %25 : vector<256xf32> to vector<256x1xf32>
    %27 = math.log %26 : vector<256x1xf32>
    %28 = vector.broadcast %27 : vector<256x1xf32> to vector<256x3xf32>
    %29 = arith.subf %23, %28 : vector<256x3xf32>
    %c0_19 = arith.constant 0 : index
    %c0_20 = arith.constant 0 : index
    %30 = vector.load %arg8[%c0_19, %c0_20] : memref<256x3xf32, #tpu.memory_space<vmem>>, vector<256x3xf32>
    tpu.vector_store %arg8[%c0_19, %c0_20], %29 {strides = array<i32>} : memref<256x3xf32, #tpu.memory_space<vmem>>, vector<256x3xf32>,
    return
  }
  func.func @transform_0(%arg0: i32) -> (i32, i32) {
    %c0_i32 = arith.constant 0 : i32
    %c0_i32_0 = arith.constant 0 : i32
    return %arg0, %c0_i32 : i32, i32
  }
  func.func @transform_1(%arg0: i32) -> (i32, i32) {
    %c0_i32 = arith.constant 0 : i32
    %c0_i32_0 = arith.constant 0 : i32
    %c0_i32_1 = arith.constant 0 : i32
    return %c0_i32, %c0_i32_0 : i32, i32
  }
  func.func @transform_2(%arg0: i32) -> (i32, i32) {
    %c0_i32 = arith.constant 0 : i32
    %c0_i32_0 = arith.constant 0 : i32
    %c0_i32_1 = arith.constant 0 : i32
    return %c0_i32, %c0_i32_0 : i32, i32
  }
  func.func @transform_3(%arg0: i32) -> (i32, i32) {
    %c0_i32 = arith.constant 0 : i32
    %c0_i32_0 = arith.constant 0 : i32
    %c0_i32_1 = arith.constant 0 : i32
    return %c0_i32, %c0_i32_0 : i32, i32
  }
  func.func @transform_4(%arg0: i32) -> (i32, i32) {
    %c0_i32 = arith.constant 0 : i32
    %c0_i32_0 = arith.constant 0 : i32
    %c0_i32_1 = arith.constant 0 : i32
    return %c0_i32, %c0_i32_0 : i32, i32
  }
  func.func @transform_5(%arg0: i32) -> (i32, i32) {
    %c0_i32 = arith.constant 0 : i32
    %c0_i32_0 = arith.constant 0 : i32
    %c0_i32_1 = arith.constant 0 : i32
    return %c0_i32, %c0_i32_0 : i32, i32
  }
  func.func @transform_6(%arg0: i32) -> (i32, i32) {
    %c0_i32 = arith.constant 0 : i32
    %c0_i32_0 = arith.constant 0 : i32
    %c0_i32_1 = arith.constant 0 : i32
    return %c0_i32, %c0_i32_0 : i32, i32
  }
  func.func @transform_7(%arg0: i32) -> (i32, i32) {
    %c0_i32 = arith.constant 0 : i32
    %c0_i32_0 = arith.constant 0 : i32
    return %arg0, %c0_i32 : i32, i32
  }
}

</mosaic_0001>

<bundles_post_ra>
// kernel: scfcst_forward.1
= control target key start
LH: loop header
LB: loop body
LE: loop exit
PB: predicated region body
PF: predicated region fallthrough
CT: control target
= control target key end

     0   :  { %vm73_vm0 = vcmask 146432   ;;  %vm170_vm1 = vcmask 1041408   ;;  %vm534_vm2 = vcmask 1043456   ;;  %vm2049_vm3 = vmmov 1   ;;  %s2865_s1 = inlined_call_operand.vmem [shape: f32[18,12], index: 1, kind: input, shape index: {}]   ;;  %s2866_s0 = inlined_call_operand.vmem [shape: f32[256,18], index: 0, kind: input, shape index: {}]   ;;  %s2867_s3 = inlined_call_operand.vmem [shape: f32[12,6], index: 3, kind: input, shape index: {}]   ;;  %s2868_s5 = inlined_call_operand.vmem [shape: f32[6,3], index: 5, kind: input, shape index: {}]   ;;  %s2869_s2 = inlined_call_operand.vmem [shape: f32[1,12], index: 2, kind: input, shape index: {}]   ;;  %s2870_s4 = inlined_call_operand.vmem [shape: f32[1,6], index: 4, kind: input, shape index: {}]   ;;  %s2871_s6 = inlined_call_operand.vmem [shape: f32[1,3], index: 6, kind: input, shape index: {}]   ;;  %s2872_s7 = inlined_call_operand.vmem [shape: f32[256,3], index: 7, kind: output, shape index: {}]  }
   0x1   :  { %v26_v0 = vld [vmem:[%s2865_s1] sm:$0xff]  ;;  %v27_v1 = vld [vmem:[%s2865_s1 + $0x8] sm:$0xff]  ;;  %v28_v4 = vld [vmem:[%s2865_s1 + $0x10] sm:$0x3]  ;;  %vm898_vm5 = vcmask 1045504   ;;  %vm437_vm6 = vcmask 97280  }
   0x2   :  { %v1908_v2 = vpack.c.bf16 %v27_v1, %v26_v0  ;;  %v35_v3 = vld [vmem:[%s2866_s0] sm:$0xff]  ;;  %v36_v5 = vld [vmem:[%s2866_s0 + $0x8] sm:$0xff]  ;;  %v37_v6 = vld [vmem:[%s2866_s0 + $0x10] sm:$0xff]  ;;  %vm801_vm7 = vcmask 48128   ;;  %vm1127_vm8 = vcmask 23552  }
   0x3   :  { %1758 = vmatprep.mubr.msk.f32.mxu0 %vm73_vm0, %v35_v3  ;;  %v38_v7 = vld [vmem:[%s2866_s0 + $0x18] sm:$0xff]  ;;  %v39_v8 = vld [vmem:[%s2866_s0 + $0x20] sm:$0xff]  ;;  %v31_v10 = vld [vmem:[%s2867_s3 + $0x8] sm:$0xf] }
   0x4   :  { %1909 = vmatprep.subr.bf16.mxu0 %v1908_v2  ;;  %v30_v9 = vld [vmem:[%s2867_s3] sm:$0xff]  ;;  %vm1913_vm4 = vmpackc.low %vm534_vm2, %vm2049_vm3  ;;  %v40_v12 = vld [vmem:[%s2866_s0 + $0x28] sm:$0xff] }
   0x5   :  { %1911 = vmatpush3.bf16.msra.mxu0 %v1908_v2  ;;  %v1912_v11 = vpack.c.bf16 %v31_v10, %v30_v9  ;;  %v41_v13 = vld [vmem:[%s2866_s0 + $0x30] sm:$0xff]  ;;  %v42_v14 = vld [vmem:[%s2866_s0 + $0x38] sm:$0xff]  ;;  %v43_v15 = vld [vmem:[%s2866_s0 + $0x40] sm:$0xff] }
   0x6   :  { %1756 = vmatprep.subr.msk.mxu0 %vm170_vm1, %v28_v4  ;;  %v44_v16 = vld [vmem:[%s2866_s0 + $0x48] sm:$0xff]  ;;  %v45_v17 = vld [vmem:[%s2866_s0 + $0x50] sm:$0xff]  ;;  %v46_v18 = vld [vmem:[%s2866_s0 + $0x58] sm:$0xff] }
   0x7   :  { %1918 = vmatprep.subr.msk.bf16.mxu1 %vm1913_vm4, %v1912_v11  ;;  %v47_v19 = vld [vmem:[%s2866_s0 + $0x60] sm:$0xff]  ;;  %v48_v20 = vld [vmem:[%s2866_s0 + $0x68] sm:$0xff]  ;;  %v49_v21 = vld [vmem:[%s2866_s0 + $0x70] sm:$0xff] }
   0x8   :  { %1919 = vmatpush3.bf16.msk.msra.mxu1 %vm1913_vm4, %v1912_v11  ;;  %v50_v22 = vld [vmem:[%s2866_s0 + $0x78] sm:$0xff]  ;;  %v51_v23 = vld [vmem:[%s2866_s0 + $0x80] sm:$0xff]  ;;  %v52_v24 = vld [vmem:[%s2866_s0 + $0x88] sm:$0xff] }
   0x9   :  { %1757 = vmatpush3.msk.msra.mxu0 %vm170_vm1, %v28_v4  ;;  %v53_v25 = vld [vmem:[%s2866_s0 + $0x90] sm:$0xff]  ;;  %v54_v26 = vld [vmem:[%s2866_s0 + $0x98] sm:$0xff]  ;;  %v55_v27 = vld [vmem:[%s2866_s0 + $0xa0] sm:$0xff] }
   0xa   :  { %1759 = vmatmul.mubr.msk.f32.vlgmr.msra.gmra.mrb[0].mxu0 %vm73_vm0, %v36_v5  ;;  %1914 = vmatprep.subr.msk.bf16.mxu0 %vm1913_vm4, %v1912_v11  ;;  %v56_v28 = vld [vmem:[%s2866_s0 + $0xa8] sm:$0xff]  ;;  %v57_v29 = vld [vmem:[%s2866_s0 + $0xb0] sm:$0xff]  ;;  %v58_v30 = vld [vmem:[%s2866_s0 + $0xb8] sm:$0xff] }
   0xb   :  { %1761 = vmatprep.mubr.msk.f32.mxu0 %vm73_vm0, %v37_v6  ;;  %1917 = vmatpush3.bf16.msk.msra.mxu0 %vm1913_vm4, %v1912_v11  ;;  %v59_v31 = vld [vmem:[%s2866_s0 + $0xc0] sm:$0xff]  ;;  %v60_v32 = vld [vmem:[%s2866_s0 + $0xc8] sm:$0xff]  ;;  %v61_v33 = vld [vmem:[%s2866_s0 + $0xd0] sm:$0xff] }
   0xc   :  { %v62_v34 = vld [vmem:[%s2866_s0 + $0xd8] sm:$0xff]  ;;  %v63_v35 = vld [vmem:[%s2866_s0 + $0xe0] sm:$0xff]  ;;  %v64_v36 = vld [vmem:[%s2866_s0 + $0xe8] sm:$0xff] }
   0xd   :  { %v65_v37 = vld [vmem:[%s2866_s0 + $0xf0] sm:$0xff]  ;;  %v66_v38 = vld [vmem:[%s2866_s0 + $0xf8] sm:$0xff]  ;;  %v2236_v39 = vld [vmem:[%s2868_s5] sm:$0x3f] }
   0xe   :  { %1762 = vmatmul.mubr.msk.f32.gmra.mrb[2].mxu0 %vm73_vm0, %v38_v7  ;;  %1858 = vmatprep.subr.msk.mxu1 %vm898_vm5, %v2236_v39  ;;  %v2243_v40 = vld [vmem:[%s2869_s2] ss:$0 sm:$0xff] }
   0xf   :  { %1764 = vmatprep.mubr.msk.f32.mxu0 %vm73_vm0, %v39_v8 }
  0x12   :  { %1765 = vmatmul.mubr.msk.f32.gmra.mrb[4].mxu0 %vm73_vm0, %v40_v12 }
  0x13   :  { %1767 = vmatprep.mubr.msk.f32.mxu0 %vm73_vm0, %v41_v13 }
  0x16   :  { %1768 = vmatmul.mubr.msk.f32.gmra.mrb[6].mxu0 %vm73_vm0, %v42_v14 }
  0x17   :  { %1770 = vmatprep.mubr.msk.f32.mxu0 %vm73_vm0, %v43_v15 }
  0x1a   :  { %1771 = vmatmul.mubr.msk.f32.gmra.mrb[8].mxu0 %vm73_vm0, %v44_v16 }
  0x1b   :  { %1773 = vmatprep.mubr.msk.f32.mxu0 %vm73_vm0, %v45_v17 }
  0x1e   :  { %1774 = vmatmul.mubr.msk.f32.gmra.mrb[10].mxu0 %vm73_vm0, %v46_v18 }
  0x1f   :  { %1776 = vmatprep.mubr.msk.f32.mxu0 %vm73_vm0, %v47_v19 }
  0x22   :  { %1777 = vmatmul.mubr.msk.f32.gmra.mrb[12].mxu0 %vm73_vm0, %v48_v20 }
  0x23   :  { %1779 = vmatprep.mubr.msk.f32.mxu0 %vm73_vm0, %v49_v21 }
  0x26   :  { %1780 = vmatmul.mubr.msk.f32.gmra.mrb[14].mxu0 %vm73_vm0, %v50_v22 }
  0x27   :  { %1782 = vmatprep.mubr.msk.f32.mxu0 %vm73_vm0, %v51_v23 }
  0x2a   :  { %1783 = vmatmul.mubr.msk.f32.gmra.mrb[16].mxu0 %vm73_vm0, %v52_v24 }
  0x2b   :  { %1785 = vmatprep.mubr.msk.f32.mxu0 %vm73_vm0, %v53_v25 }
  0x2e   :  { %1786 = vmatmul.mubr.msk.f32.gmra.mrb[18].mxu0 %vm73_vm0, %v54_v26 }
  0x2f   :  { %1788 = vmatprep.mubr.msk.f32.mxu0 %vm73_vm0, %v55_v27 }
  0x32   :  { %1789 = vmatmul.mubr.msk.f32.gmra.mrb[20].mxu0 %vm73_vm0, %v56_v28 }
  0x33   :  { %1791 = vmatprep.mubr.msk.f32.mxu0 %vm73_vm0, %v57_v29 }
  0x36   :  { %1792 = vmatmul.mubr.msk.f32.gmra.mrb[22].mxu0 %vm73_vm0, %v58_v30 }
  0x37   :  { %1794 = vmatprep.mubr.msk.f32.mxu0 %vm73_vm0, %v59_v31 }
  0x3a   :  { %1795 = vmatmul.mubr.msk.f32.gmra.mrb[24].mxu0 %vm73_vm0, %v60_v32 }
  0x3b   :  { %1797 = vmatprep.mubr.msk.f32.mxu0 %vm73_vm0, %v61_v33 }
  0x3e   :  { %1798 = vmatmul.mubr.msk.f32.gmra.mrb[26].mxu0 %vm73_vm0, %v62_v34 }
  0x3f   :  { %1800 = vmatprep.mubr.msk.f32.mxu0 %vm73_vm0, %v63_v35 }
  0x42   :  { %1801 = vmatmul.mubr.msk.f32.gmra.mrb[28].mxu0 %vm73_vm0, %v64_v36 }
  0x43   :  { %1803 = vmatprep.mubr.msk.f32.mxu0 %vm73_vm0, %v65_v37 }
  0x46   :  { %1804 = vmatmul.mubr.msk.f32.gmra.mrb[30].mxu0 %vm73_vm0, %v66_v38 }
  0xdd   :  { %v1760_v41 = vpop.f32.mrb[0].mxu0 }
  0xde   :  { %v246_v42 = vadd.f32 %v1760_v41, %v2243_v40  ;;  %v240_v43 = vpop.f32.mrb[1].mxu0 }
  0xdf   :  { %v241_v44 = vadd.f32 %v2243_v40, %v240_v43 }
  0xe0   :  { %v400_v47 = vmax.f32 %v246_v42, 0.0 }
  0xe1   :  { %v399_v45 = vmax.f32 %v241_v44, 0.0  ;;  %v1763_v46 = vpop.f32.mrb[2].mxu0 }
  0xe2   :  { %v256_v48 = vadd.f32 %v1763_v46, %v2243_v40  ;;  %v250_v49 = vpop.f32.mrb[3].mxu0 }
  0xe3   :  { %v251_v50 = vadd.f32 %v2243_v40, %v250_v49  ;;  %1810 = vmatprep.mubr.msk.f32.mxu0 %vm437_vm6, %v399_v45 }
  0xe4   :  { %1811 = vmatmul.mubr.msk.f32.vlgmr.msra.gmra.mrb[32].mxu0 %vm437_vm6, %v400_v47  ;;  %v402_v53 = vmax.f32 %v256_v48, 0.0 }
  0xe5   :  { %v401_v51 = vmax.f32 %v251_v50, 0.0  ;;  %v1766_v52 = vpop.f32.mrb[4].mxu0 }
  0xe6   :  { %v266_v54 = vadd.f32 %v1766_v52, %v2243_v40  ;;  %v260_v55 = vpop.f32.mrb[5].mxu0 }
  0xe7   :  { %v261_v56 = vadd.f32 %v2243_v40, %v260_v55  ;;  %1813 = vmatprep.mubr.msk.f32.mxu0 %vm437_vm6, %v401_v51 }
  0xe8   :  { %v404_v57 = vmax.f32 %v266_v54, 0.0  ;;  %1814 = vmatmul.mubr.msk.f32.gmra.mrb[34].mxu0 %vm437_vm6, %v402_v53 }
  0xe9   :  { %v403_v58 = vmax.f32 %v261_v56, 0.0  ;;  %v1769_v59 = vpop.f32.mrb[6].mxu0 }
  0xea   :  { %v276_v60 = vadd.f32 %v1769_v59, %v2243_v40  ;;  %v270_v61 = vpop.f32.mrb[7].mxu0 }
  0xeb   :  { %v271_v62 = vadd.f32 %v2243_v40, %v270_v61  ;;  %1816 = vmatprep.mubr.msk.f32.mxu0 %vm437_vm6, %v403_v58 }
  0xec   :  { %v406_v63 = vmax.f32 %v276_v60, 0.0  ;;  %1817 = vmatmul.mubr.msk.f32.gmra.mrb[36].mxu0 %vm437_vm6, %v404_v57 }
  0xed   :  { %v405_v0 = vmax.f32 %v271_v62, 0.0  ;;  %v1772_v1 = vpop.f32.mrb[8].mxu0 }
  0xee   :  { %v286_v2 = vadd.f32 %v1772_v1, %v2243_v40  ;;  %v280_v3 = vpop.f32.mrb[9].mxu0 }
  0xef   :  { %v281_v4 = vadd.f32 %v2243_v40, %v280_v3  ;;  %1819 = vmatprep.mubr.msk.f32.mxu0 %vm437_vm6, %v405_v0 }
  0xf0   :  { %v408_v5 = vmax.f32 %v286_v2, 0.0  ;;  %1820 = vmatmul.mubr.msk.f32.gmra.mrb[38].mxu0 %vm437_vm6, %v406_v63 }
  0xf1   :  { %v407_v6 = vmax.f32 %v281_v4, 0.0  ;;  %v1775_v7 = vpop.f32.mrb[10].mxu0 }
  0xf2   :  { %v296_v8 = vadd.f32 %v1775_v7, %v2243_v40  ;;  %v290_v9 = vpop.f32.mrb[11].mxu0 }
  0xf3   :  { %v291_v10 = vadd.f32 %v2243_v40, %v290_v9  ;;  %1822 = vmatprep.mubr.msk.f32.mxu0 %vm437_vm6, %v407_v6 }
  0xf4   :  { %v410_v11 = vmax.f32 %v296_v8, 0.0  ;;  %1823 = vmatmul.mubr.msk.f32.gmra.mrb[40].mxu0 %vm437_vm6, %v408_v5 }
  0xf5   :  { %v409_v12 = vmax.f32 %v291_v10, 0.0  ;;  %v1778_v13 = vpop.f32.mrb[12].mxu0  ;;  %v2314_v10 = vld [vmem:[%s2870_s4] ss:$0 sm:$0xff] }
  0xf6   :  { %v306_v14 = vadd.f32 %v1778_v13, %v2243_v40  ;;  %v300_v15 = vpop.f32.mrb[13].mxu0 }
  0xf7   :  { %v301_v16 = vadd.f32 %v2243_v40, %v300_v15  ;;  %1825 = vmatprep.mubr.msk.f32.mxu0 %vm437_vm6, %v409_v12 }
  0xf8   :  { %v412_v17 = vmax.f32 %v306_v14, 0.0  ;;  %1826 = vmatmul.mubr.msk.f32.gmra.mrb[42].mxu0 %vm437_vm6, %v410_v11 }
  0xf9   :  { %v411_v18 = vmax.f32 %v301_v16, 0.0  ;;  %v1781_v19 = vpop.f32.mrb[14].mxu0 }
  0xfa   :  { %v316_v20 = vadd.f32 %v1781_v19, %v2243_v40  ;;  %v310_v21 = vpop.f32.mrb[15].mxu0 }
  0xfb   :  { %v311_v22 = vadd.f32 %v2243_v40, %v310_v21  ;;  %1828 = vmatprep.mubr.msk.f32.mxu0 %vm437_vm6, %v411_v18 }
  0xfc   :  { %v414_v23 = vmax.f32 %v316_v20, 0.0  ;;  %1829 = vmatmul.mubr.msk.f32.gmra.mrb[44].mxu0 %vm437_vm6, %v412_v17 }
  0xfd   :  { %v413_v24 = vmax.f32 %v311_v22, 0.0  ;;  %v1784_v25 = vpop.f32.mrb[16].mxu0 }
  0xfe   :  { %v326_v26 = vadd.f32 %v1784_v25, %v2243_v40  ;;  %v320_v27 = vpop.f32.mrb[17].mxu0 }
  0xff   :  { %v321_v28 = vadd.f32 %v2243_v40, %v320_v27  ;;  %1831 = vmatprep.mubr.msk.f32.mxu1 %vm437_vm6, %v413_v24 }
 0x100   :  { %v416_v29 = vmax.f32 %v326_v26, 0.0  ;;  %1832 = vmatmul.mubr.msk.f32.vlgmr.msra.gmra.mrb[0].mxu1 %vm437_vm6, %v414_v23 }
 0x101   :  { %v415_v30 = vmax.f32 %v321_v28, 0.0  ;;  %v1787_v31 = vpop.f32.mrb[18].mxu0  ;;  %1859 = vmatpush3.msk.msra.mxu1 %vm898_vm5, %v2236_v39 }
 0x102   :  { %v336_v32 = vadd.f32 %v1787_v31, %v2243_v40  ;;  %v330_v33 = vpop.f32.mrb[19].mxu0 }
 0x103   :  { %v331_v34 = vadd.f32 %v2243_v40, %v330_v33  ;;  %1834 = vmatprep.mubr.msk.f32.mxu1 %vm437_vm6, %v415_v30 }
 0x104   :  { %v418_v35 = vmax.f32 %v336_v32, 0.0  ;;  %1835 = vmatmul.mubr.msk.f32.gmra.mrb[2].mxu1 %vm437_vm6, %v416_v29 }
 0x105   :  { %v417_v36 = vmax.f32 %v331_v34, 0.0  ;;  %v1790_v37 = vpop.f32.mrb[20].mxu0 }
 0x106   :  { %v346_v38 = vadd.f32 %v1790_v37, %v2243_v40  ;;  %v340_v41 = vpop.f32.mrb[21].mxu0 }
 0x107   :  { %v341_v42 = vadd.f32 %v2243_v40, %v340_v41  ;;  %1837 = vmatprep.mubr.msk.f32.mxu1 %vm437_vm6, %v417_v36 }
 0x108   :  { %v420_v39 = vmax.f32 %v346_v38, 0.0  ;;  %1838 = vmatmul.mubr.msk.f32.gmra.mrb[4].mxu1 %vm437_vm6, %v418_v35 }
 0x109   :  { %v419_v43 = vmax.f32 %v341_v42, 0.0  ;;  %v1793_v44 = vpop.f32.mrb[22].mxu0 }
 0x10a   :  { %v356_v45 = vadd.f32 %v1793_v44, %v2243_v40  ;;  %v350_v46 = vpop.f32.mrb[23].mxu0 }
 0x10b   :  { %v351_v47 = vadd.f32 %v2243_v40, %v350_v46  ;;  %1840 = vmatprep.mubr.msk.f32.mxu1 %vm437_vm6, %v419_v43 }
 0x10c   :  { %v422_v48 = vmax.f32 %v356_v45, 0.0  ;;  %1841 = vmatmul.mubr.msk.f32.gmra.mrb[6].mxu1 %vm437_vm6, %v420_v39 }
 0x10d   :  { %v421_v49 = vmax.f32 %v351_v47, 0.0  ;;  %v1796_v50 = vpop.f32.mrb[24].mxu0 }
 0x10e   :  { %v366_v51 = vadd.f32 %v1796_v50, %v2243_v40  ;;  %v360_v52 = vpop.f32.mrb[25].mxu0 }
 0x10f   :  { %v361_v53 = vadd.f32 %v2243_v40, %v360_v52  ;;  %1843 = vmatprep.mubr.msk.f32.mxu1 %vm437_vm6, %v421_v49 }
 0x110   :  { %v424_v54 = vmax.f32 %v366_v51, 0.0  ;;  %1844 = vmatmul.mubr.msk.f32.gmra.mrb[8].mxu1 %vm437_vm6, %v422_v48 }
 0x111   :  { %v423_v55 = vmax.f32 %v361_v53, 0.0  ;;  %v1799_v56 = vpop.f32.mrb[26].mxu0 }
 0x112   :  { %v376_v57 = vadd.f32 %v1799_v56, %v2243_v40  ;;  %v370_v58 = vpop.f32.mrb[27].mxu0 }
 0x113   :  { %v371_v59 = vadd.f32 %v2243_v40, %v370_v58  ;;  %1846 = vmatprep.mubr.msk.f32.mxu1 %vm437_vm6, %v423_v55 }
 0x114   :  { %v426_v60 = vmax.f32 %v376_v57, 0.0  ;;  %1847 = vmatmul.mubr.msk.f32.gmra.mrb[10].mxu1 %vm437_vm6, %v424_v54 }
 0x115   :  { %v425_v61 = vmax.f32 %v371_v59, 0.0  ;;  %v1802_v62 = vpop.f32.mrb[28].mxu0 }
 0x116   :  { %v386_v63 = vadd.f32 %v1802_v62, %v2243_v40  ;;  %v380_v0 = vpop.f32.mrb[29].mxu0 }
 0x117   :  { %v381_v1 = vadd.f32 %v2243_v40, %v380_v0  ;;  %1849 = vmatprep.mubr.msk.f32.mxu1 %vm437_vm6, %v425_v61 }
 0x118   :  { %v428_v2 = vmax.f32 %v386_v63, 0.0  ;;  %1850 = vmatmul.mubr.msk.f32.gmra.mrb[12].mxu1 %vm437_vm6, %v426_v60 }
 0x119   :  { %v427_v3 = vmax.f32 %v381_v1, 0.0  ;;  %v1805_v4 = vpop.f32.mrb[30].mxu0 }
 0x11a   :  { %v396_v5 = vadd.f32 %v1805_v4, %v2243_v40  ;;  %v390_v6 = vpop.f32.mrb[31].mxu0 }
 0x11b   :  { %v391_v7 = vadd.f32 %v2243_v40, %v390_v6  ;;  %1852 = vmatprep.mubr.msk.f32.mxu1 %vm437_vm6, %v427_v3 }
 0x11c   :  { %v430_v8 = vmax.f32 %v396_v5, 0.0  ;;  %1853 = vmatmul.mubr.msk.f32.gmra.mrb[14].mxu1 %vm437_vm6, %v428_v2 }
 0x11d   :  { %v429_v9 = vmax.f32 %v391_v7, 0.0 }
 0x11f   :  { %1855 = vmatprep.mubr.msk.f32.mxu1 %vm437_vm6, %v429_v9 }
 0x120   :  { %1856 = vmatmul.mubr.msk.f32.gmra.mrb[16].mxu1 %vm437_vm6, %v430_v8 }
 0x1b7   :  { %v1812_v11 = vpop.f32.mrb[32].mxu0 }
 0x1b8   :  { %v610_v12 = vadd.f32 %v1812_v11, %v2314_v10  ;;  %v604_v13 = vpop.f32.mrb[33].mxu0 }
 0x1b9   :  { %v605_v40 = vadd.f32 %v2314_v10, %v604_v13 }
 0x1ba   :  { %v764_v16 = vmax.f32 %v610_v12, 0.0 }
 0x1bb   :  { %v763_v14 = vmax.f32 %v605_v40, 0.0  ;;  %v1815_v15 = vpop.f32.mrb[34].mxu0 }
 0x1bc   :  { %v620_v17 = vadd.f32 %v1815_v15, %v2314_v10  ;;  %v614_v18 = vpop.f32.mrb[35].mxu0 }
 0x1bd   :  { %v615_v19 = vadd.f32 %v2314_v10, %v614_v18  ;;  %1860 = vmatprep.mubr.msk.f32.mxu1 %vm801_vm7, %v763_v14 }
 0x1be   :  { %1861 = vmatmul.mubr.msk.f32.vlgmr.msra.gmra.mrb[18].mxu1 %vm801_vm7, %v764_v16  ;;  %v766_v22 = vmax.f32 %v620_v17, 0.0 }
 0x1bf   :  { %v765_v20 = vmax.f32 %v615_v19, 0.0  ;;  %v1818_v21 = vpop.f32.mrb[36].mxu0 }
 0x1c0   :  { %v630_v23 = vadd.f32 %v1818_v21, %v2314_v10  ;;  %v624_v24 = vpop.f32.mrb[37].mxu0 }
 0x1c1   :  { %v625_v25 = vadd.f32 %v2314_v10, %v624_v24  ;;  %1863 = vmatprep.mubr.msk.f32.mxu1 %vm801_vm7, %v765_v20 }
 0x1c2   :  { %v768_v26 = vmax.f32 %v630_v23, 0.0  ;;  %1864 = vmatmul.mubr.msk.f32.gmra.mrb[20].mxu1 %vm801_vm7, %v766_v22 }
 0x1c3   :  { %v767_v27 = vmax.f32 %v625_v25, 0.0  ;;  %v1821_v28 = vpop.f32.mrb[38].mxu0 }
 0x1c4   :  { %v640_v29 = vadd.f32 %v1821_v28, %v2314_v10  ;;  %v634_v30 = vpop.f32.mrb[39].mxu0 }
 0x1c5   :  { %v635_v31 = vadd.f32 %v2314_v10, %v634_v30  ;;  %1866 = vmatprep.mubr.msk.f32.mxu1 %vm801_vm7, %v767_v27 }
 0x1c6   :  { %v770_v32 = vmax.f32 %v640_v29, 0.0  ;;  %1867 = vmatmul.mubr.msk.f32.gmra.mrb[22].mxu1 %vm801_vm7, %v768_v26 }
 0x1c7   :  { %v769_v33 = vmax.f32 %v635_v31, 0.0  ;;  %v1824_v34 = vpop.f32.mrb[40].mxu0 }
 0x1c8   :  { %v650_v35 = vadd.f32 %v1824_v34, %v2314_v10  ;;  %v644_v36 = vpop.f32.mrb[41].mxu0 }
 0x1c9   :  { %v645_v37 = vadd.f32 %v2314_v10, %v644_v36  ;;  %1869 = vmatprep.mubr.msk.f32.mxu1 %vm801_vm7, %v769_v33 }
 0x1ca   :  { %v772_v38 = vmax.f32 %v650_v35, 0.0  ;;  %1870 = vmatmul.mubr.msk.f32.gmra.mrb[24].mxu1 %vm801_vm7, %v770_v32 }
 0x1cb   :  { %v771_v41 = vmax.f32 %v645_v37, 0.0  ;;  %v1827_v42 = vpop.f32.mrb[42].mxu0 }
 0x1cc   :  { %v660_v39 = vadd.f32 %v1827_v42, %v2314_v10  ;;  %v654_v43 = vpop.f32.mrb[43].mxu0 }
 0x1cd   :  { %v655_v44 = vadd.f32 %v2314_v10, %v654_v43  ;;  %1872 = vmatprep.mubr.msk.f32.mxu1 %vm801_vm7, %v771_v41 }
 0x1ce   :  { %v774_v45 = vmax.f32 %v660_v39, 0.0  ;;  %1873 = vmatmul.mubr.msk.f32.gmra.mrb[26].mxu1 %vm801_vm7, %v772_v38 }
 0x1cf   :  { %v773_v46 = vmax.f32 %v655_v44, 0.0  ;;  %v1830_v47 = vpop.f32.mrb[44].mxu0  ;;  %v2383_v44 = vld [vmem:[%s2871_s6] ss:$0 sm:$0xff] }
 0x1d0   :  { %v670_v48 = vadd.f32 %v1830_v47, %v2314_v10  ;;  %v664_v49 = vpop.f32.mrb[45].mxu0 }
 0x1d1   :  { %v665_v50 = vadd.f32 %v2314_v10, %v664_v49  ;;  %1875 = vmatprep.mubr.msk.f32.mxu1 %vm801_vm7, %v773_v46 }
 0x1d2   :  { %v776_v51 = vmax.f32 %v670_v48, 0.0  ;;  %1876 = vmatmul.mubr.msk.f32.gmra.mrb[28].mxu1 %vm801_vm7, %v774_v45 }
 0x1d3   :  { %v775_v52 = vmax.f32 %v665_v50, 0.0  ;;  %v1833_v53 = vpop.f32.mrb[0].mxu1 }
 0x1d4   :  { %v680_v54 = vadd.f32 %v1833_v53, %v2314_v10  ;;  %v674_v55 = vpop.f32.mrb[1].mxu1 }
 0x1d5   :  { %v675_v56 = vadd.f32 %v2314_v10, %v674_v55  ;;  %1878 = vmatprep.mubr.msk.f32.mxu1 %vm801_vm7, %v775_v52 }
 0x1d6   :  { %v778_v57 = vmax.f32 %v680_v54, 0.0  ;;  %1879 = vmatmul.mubr.msk.f32.gmra.mrb[30].mxu1 %vm801_vm7, %v776_v51 }
 0x1d7   :  { %v777_v58 = vmax.f32 %v675_v56, 0.0  ;;  %v1836_v59 = vpop.f32.mrb[2].mxu1 }
 0x1d8   :  { %v690_v60 = vadd.f32 %v1836_v59, %v2314_v10  ;;  %v684_v61 = vpop.f32.mrb[3].mxu1 }
 0x1d9   :  { %v685_v62 = vadd.f32 %v2314_v10, %v684_v61  ;;  %1881 = vmatprep.mubr.msk.f32.mxu1 %vm801_vm7, %v777_v58 }
 0x1da   :  { %v780_v63 = vmax.f32 %v690_v60, 0.0  ;;  %1882 = vmatmul.mubr.msk.f32.gmra.mrb[32].mxu1 %vm801_vm7, %v778_v57 }
 0x1db   :  { %v779_v0 = vmax.f32 %v685_v62, 0.0  ;;  %v1839_v1 = vpop.f32.mrb[4].mxu1 }
 0x1dc   :  { %v700_v2 = vadd.f32 %v1839_v1, %v2314_v10  ;;  %v694_v3 = vpop.f32.mrb[5].mxu1 }
 0x1dd   :  { %v695_v4 = vadd.f32 %v2314_v10, %v694_v3  ;;  %1884 = vmatprep.mubr.msk.f32.mxu1 %vm801_vm7, %v779_v0 }
 0x1de   :  { %v782_v5 = vmax.f32 %v700_v2, 0.0  ;;  %1885 = vmatmul.mubr.msk.f32.gmra.mrb[34].mxu1 %vm801_vm7, %v780_v63 }
 0x1df   :  { %v781_v6 = vmax.f32 %v695_v4, 0.0  ;;  %v1842_v7 = vpop.f32.mrb[6].mxu1 }
 0x1e0   :  { %v710_v8 = vadd.f32 %v1842_v7, %v2314_v10  ;;  %v704_v9 = vpop.f32.mrb[7].mxu1 }
 0x1e1   :  { %v705_v11 = vadd.f32 %v2314_v10, %v704_v9  ;;  %1887 = vmatprep.mubr.msk.f32.mxu1 %vm801_vm7, %v781_v6 }
 0x1e2   :  { %v784_v12 = vmax.f32 %v710_v8, 0.0  ;;  %1888 = vmatmul.mubr.msk.f32.gmra.mrb[36].mxu1 %vm801_vm7, %v782_v5 }
 0x1e3   :  { %v783_v13 = vmax.f32 %v705_v11, 0.0  ;;  %v1845_v40 = vpop.f32.mrb[8].mxu1 }
 0x1e4   :  { %v720_v14 = vadd.f32 %v1845_v40, %v2314_v10  ;;  %v714_v15 = vpop.f32.mrb[9].mxu1 }
 0x1e5   :  { %v715_v16 = vadd.f32 %v2314_v10, %v714_v15  ;;  %1890 = vmatprep.mubr.msk.f32.mxu1 %vm801_vm7, %v783_v13 }
 0x1e6   :  { %v786_v17 = vmax.f32 %v720_v14, 0.0  ;;  %1891 = vmatmul.mubr.msk.f32.gmra.mrb[38].mxu1 %vm801_vm7, %v784_v12 }
 0x1e7   :  { %v785_v18 = vmax.f32 %v715_v16, 0.0  ;;  %v1848_v19 = vpop.f32.mrb[10].mxu1 }
 0x1e8   :  { %v730_v20 = vadd.f32 %v1848_v19, %v2314_v10  ;;  %v724_v21 = vpop.f32.mrb[11].mxu1 }
 0x1e9   :  { %v725_v22 = vadd.f32 %v2314_v10, %v724_v21  ;;  %1893 = vmatprep.mubr.msk.f32.mxu1 %vm801_vm7, %v785_v18 }
 0x1ea   :  { %v788_v23 = vmax.f32 %v730_v20, 0.0  ;;  %1894 = vmatmul.mubr.msk.f32.gmra.mrb[40].mxu1 %vm801_vm7, %v786_v17 }
 0x1eb   :  { %v787_v24 = vmax.f32 %v725_v22, 0.0  ;;  %v1851_v25 = vpop.f32.mrb[12].mxu1 }
 0x1ec   :  { %v740_v26 = vadd.f32 %v1851_v25, %v2314_v10  ;;  %v734_v27 = vpop.f32.mrb[13].mxu1 }
 0x1ed   :  { %v735_v28 = vadd.f32 %v2314_v10, %v734_v27  ;;  %1896 = vmatprep.mubr.msk.f32.mxu1 %vm801_vm7, %v787_v24 }
 0x1ee   :  { %v790_v29 = vmax.f32 %v740_v26, 0.0  ;;  %1897 = vmatmul.mubr.msk.f32.gmra.mrb[42].mxu1 %vm801_vm7, %v788_v23 }
 0x1ef   :  { %v789_v30 = vmax.f32 %v735_v28, 0.0  ;;  %v1854_v31 = vpop.f32.mrb[14].mxu1 }
 0x1f0   :  { %v750_v32 = vadd.f32 %v1854_v31, %v2314_v10  ;;  %v744_v33 = vpop.f32.mrb[15].mxu1 }
 0x1f1   :  { %v745_v34 = vadd.f32 %v2314_v10, %v744_v33  ;;  %1899 = vmatprep.mubr.msk.f32.mxu1 %vm801_vm7, %v789_v30 }
 0x1f2   :  { %v792_v35 = vmax.f32 %v750_v32, 0.0  ;;  %1900 = vmatmul.mubr.msk.f32.gmra.mrb[44].mxu1 %vm801_vm7, %v790_v29 }
 0x1f3   :  { %v791_v36 = vmax.f32 %v745_v34, 0.0  ;;  %v1857_v37 = vpop.f32.mrb[16].mxu1 }
 0x1f4   :  { %v760_v38 = vadd.f32 %v1857_v37, %v2314_v10  ;;  %v754_v41 = vpop.f32.mrb[17].mxu1 }
 0x1f5   :  { %v755_v42 = vadd.f32 %v2314_v10, %v754_v41  ;;  %1902 = vmatprep.mubr.msk.f32.mxu1 %vm801_vm7, %v791_v36 }
 0x1f6   :  { %v794_v39 = vmax.f32 %v760_v38, 0.0  ;;  %1903 = vmatmul.mubr.msk.f32.gmra.mrb[46].mxu1 %vm801_vm7, %v792_v35 }
 0x1f7   :  { %v793_v43 = vmax.f32 %v755_v42, 0.0 }
 0x1f9   :  { %1905 = vmatprep.mubr.msk.f32.mxu1 %vm801_vm7, %v793_v43 }
 0x1fa   :  { %1906 = vmatmul.mubr.msk.f32.gmra.mrb[48].mxu1 %vm801_vm7, %v794_v39 }
 0x291   :  { %v1862_v45 = vpop.f32.mrb[18].mxu1 }
 0x292   :  { %v2386_v46 = vadd.f32 %v1862_v45, %v2383_v44  ;;  %v968_v10 = vpop.f32.mrb[19].mxu1 }
 0x293   :  { %v2389_v47 = vadd.f32 %v2383_v44, %v968_v10 }
 0x294   :  { %v1131_v48 = vsel %vm1127_vm8, %v2386_v46, -inf }
 0x295   :  { %1132 = vmax.xlane.f32.xlu0 %v1131_v48  ;;  %v1865_v49 = vpop.f32.mrb[20].mxu1  ;;  %v1128_v54 = vsel %vm1127_vm8, %v2389_v47, -inf }
 0x296   :  { %v2394_v50 = vadd.f32 %v1865_v49, %v2383_v44  ;;  %v978_v51 = vpop.f32.mrb[21].mxu1 }
 0x297   :  { %v2397_v52 = vadd.f32 %v2383_v44, %v978_v51 }
 0x298   :  { %v1137_v53 = vsel %vm1127_vm8, %v2394_v50, -inf }
 0x299   :  { %1138 = vmax.xlane.f32.xlu1 %v1137_v53  ;;  %v1868_v55 = vpop.f32.mrb[22].mxu1  ;;  %1129 = vmax.xlane.f32.xlu0 %v1128_v54  ;;  %v1134_v59 = vsel %vm1127_vm8, %v2397_v52, -inf }
 0x29a   :  { %v988_v56 = vpop.f32.mrb[23].mxu1  ;;  %v2407_v58 = vadd.f32 %v1868_v55, %v2383_v44 }
 0x29b   :  { %v2404_v57 = vadd.f32 %v2383_v44, %v988_v56 }
 0x29c   :  { %v1143_v1 = vsel %vm1127_vm8, %v2407_v58, -inf }
 0x29d   :  { %v1871_v60 = vpop.f32.mrb[24].mxu1  ;;  %1135 = vmax.xlane.f32.xlu1 %v1134_v59  ;;  %v1140_v61 = vsel %vm1127_vm8, %v2404_v57, -inf }
 0x29e   :  { %v998_v62 = vpop.f32.mrb[25].mxu1  ;;  %1141 = vmax.xlane.f32.xlu0 %v1140_v61  ;;  %v2417_v0 = vadd.f32 %v1871_v60, %v2383_v44 }
 0x29f   :  { %v2414_v63 = vadd.f32 %v2383_v44, %v998_v62 }
 0x2a0   :  { %v1149_v7 = vsel %vm1127_vm8, %v2417_v0, -inf }
 0x2a1   :  { %v1874_v2 = vpop.f32.mrb[26].mxu1  ;;  %1144 = vmax.xlane.f32.xlu1 %v1143_v1  ;;  %v1146_v3 = vsel %vm1127_vm8, %v2414_v63, -inf }
 0x2a2   :  { %v1008_v4 = vpop.f32.mrb[27].mxu1  ;;  %1147 = vmax.xlane.f32.xlu0 %v1146_v3  ;;  %v2427_v6 = vadd.f32 %v1874_v2, %v2383_v44 }
 0x2a3   :  { %v2424_v5 = vadd.f32 %v2383_v44, %v1008_v4 }
 0x2a4   :  { %v1155_v40 = vsel %vm1127_vm8, %v2427_v6, -inf }
 0x2a5   :  { %v1877_v8 = vpop.f32.mrb[28].mxu1  ;;  %1150 = vmax.xlane.f32.xlu1 %v1149_v7  ;;  %v1152_v9 = vsel %vm1127_vm8, %v2424_v5, -inf }
 0x2a6   :  { %v1018_v11 = vpop.f32.mrb[29].mxu1  ;;  %1153 = vmax.xlane.f32.xlu0 %v1152_v9  ;;  %v2437_v13 = vadd.f32 %v1877_v8, %v2383_v44 }
 0x2a7   :  { %v2434_v12 = vadd.f32 %v2383_v44, %v1018_v11 }
 0x2a8   :  { %v1161_v19 = vsel %vm1127_vm8, %v2437_v13, -inf }
 0x2a9   :  { %v1880_v14 = vpop.f32.mrb[30].mxu1  ;;  %1156 = vmax.xlane.f32.xlu1 %v1155_v40  ;;  %v1158_v15 = vsel %vm1127_vm8, %v2434_v12, -inf }
 0x2aa   :  { %v1028_v16 = vpop.f32.mrb[31].mxu1  ;;  %1159 = vmax.xlane.f32.xlu0 %v1158_v15  ;;  %v2447_v18 = vadd.f32 %v1880_v14, %v2383_v44 }
 0x2ab   :  { %v2444_v17 = vadd.f32 %v2383_v44, %v1028_v16 }
 0x2ac   :  { %v1167_v25 = vsel %vm1127_vm8, %v2447_v18, -inf }
 0x2ad   :  { %v1883_v20 = vpop.f32.mrb[32].mxu1  ;;  %1162 = vmax.xlane.f32.xlu1 %v1161_v19  ;;  %v1164_v21 = vsel %vm1127_vm8, %v2444_v17, -inf }
 0x2ae   :  { %v1038_v22 = vpop.f32.mrb[33].mxu1  ;;  %1165 = vmax.xlane.f32.xlu0 %v1164_v21  ;;  %v2457_v24 = vadd.f32 %v1883_v20, %v2383_v44 }
 0x2af   :  { %v2454_v23 = vadd.f32 %v2383_v44, %v1038_v22 }
 0x2b0   :  { %v1173_v31 = vsel %vm1127_vm8, %v2457_v24, -inf }
 0x2b1   :  { %v1886_v26 = vpop.f32.mrb[34].mxu1  ;;  %1168 = vmax.xlane.f32.xlu1 %v1167_v25  ;;  %v1170_v27 = vsel %vm1127_vm8, %v2454_v23, -inf }
 0x2b2   :  { %v1048_v28 = vpop.f32.mrb[35].mxu1  ;;  %1171 = vmax.xlane.f32.xlu0 %v1170_v27  ;;  %v2467_v30 = vadd.f32 %v1886_v26, %v2383_v44 }
 0x2b3   :  { %v2464_v29 = vadd.f32 %v2383_v44, %v1048_v28 }
 0x2b4   :  { %v1179_v37 = vsel %vm1127_vm8, %v2467_v30, -inf }
 0x2b5   :  { %v1889_v32 = vpop.f32.mrb[36].mxu1  ;;  %1174 = vmax.xlane.f32.xlu1 %v1173_v31  ;;  %v1176_v33 = vsel %vm1127_vm8, %v2464_v29, -inf }
 0x2b6   :  { %v1058_v34 = vpop.f32.mrb[37].mxu1  ;;  %1177 = vmax.xlane.f32.xlu0 %v1176_v33  ;;  %v2477_v36 = vadd.f32 %v1889_v32, %v2383_v44 }
 0x2b7   :  { %v2474_v35 = vadd.f32 %v2383_v44, %v1058_v34 }
 0x2b8   :  { %v1185_v45 = vsel %vm1127_vm8, %v2477_v36, -inf }
 0x2b9   :  { %v1892_v38 = vpop.f32.mrb[38].mxu1  ;;  %1180 = vmax.xlane.f32.xlu1 %v1179_v37  ;;  %v1182_v41 = vsel %vm1127_vm8, %v2474_v35, -inf }
 0x2ba   :  { %v1068_v42 = vpop.f32.mrb[39].mxu1  ;;  %1183 = vmax.xlane.f32.xlu0 %v1182_v41  ;;  %v2487_v43 = vadd.f32 %v1892_v38, %v2383_v44 }
 0x2bb   :  { %v2484_v39 = vadd.f32 %v2383_v44, %v1068_v42 }
 0x2bc   :  { %v1191_v54 = vsel %vm1127_vm8, %v2487_v43, -inf }
 0x2bd   :  { %v1895_v10 = vpop.f32.mrb[40].mxu1  ;;  %1186 = vmax.xlane.f32.xlu1 %v1185_v45  ;;  %v1188_v48 = vsel %vm1127_vm8, %v2484_v39, -inf }
 0x2be   :  { %v1078_v49 = vpop.f32.mrb[41].mxu1  ;;  %1189 = vmax.xlane.f32.xlu0 %v1188_v48  ;;  %v2497_v53 = vadd.f32 %v1895_v10, %v2383_v44 }
 0x2bf   :  { %v2494_v51 = vadd.f32 %v2383_v44, %v1078_v49 }
 0x2c0   :  { %v1197_v62 = vsel %vm1127_vm8, %v2497_v53, -inf }
 0x2c1   :  { %v1898_v55 = vpop.f32.mrb[42].mxu1  ;;  %1192 = vmax.xlane.f32.xlu1 %v1191_v54  ;;  %v1194_v56 = vsel %vm1127_vm8, %v2494_v51, -inf }
 0x2c2   :  { %v1088_v59 = vpop.f32.mrb[43].mxu1  ;;  %1195 = vmax.xlane.f32.xlu0 %v1194_v56  ;;  %v2507_v61 = vadd.f32 %v1898_v55, %v2383_v44 }
 0x2c3   :  { %v2504_v60 = vadd.f32 %v2383_v44, %v1088_v59 }
 0x2c4   :  { %v1203_v8 = vsel %vm1127_vm8, %v2507_v61, -inf }
 0x2c5   :  { %v1901_v1 = vpop.f32.mrb[44].mxu1  ;;  %1198 = vmax.xlane.f32.xlu1 %v1197_v62  ;;  %v1200_v2 = vsel %vm1127_vm8, %v2504_v60, -inf }
 0x2c6   :  { %v1098_v3 = vpop.f32.mrb[45].mxu1  ;;  %1201 = vmax.xlane.f32.xlu0 %v1200_v2  ;;  %v2517_v7 = vadd.f32 %v1901_v1, %v2383_v44 }
 0x2c7   :  { %v2514_v4 = vadd.f32 %v2383_v44, %v1098_v3 }
 0x2c8   :  { %v1209_v16 = vsel %vm1127_vm8, %v2517_v7, -inf }
 0x2c9   :  { %v1904_v9 = vpop.f32.mrb[46].mxu1  ;;  %1204 = vmax.xlane.f32.xlu1 %v1203_v8  ;;  %v1206_v11 = vsel %vm1127_vm8, %v2514_v4, -inf }
 0x2ca   :  { %v1108_v40 = vpop.f32.mrb[47].mxu1  ;;  %1207 = vmax.xlane.f32.xlu0 %v1206_v11  ;;  %v2527_v15 = vadd.f32 %v1904_v9, %v2383_v44 }
 0x2cb   :  { %v2524_v14 = vadd.f32 %v2383_v44, %v1108_v40 }
 0x2cc   :  { %v1215_v26 = vsel %vm1127_vm8, %v2527_v15, -inf }
 0x2cd   :  { %v1907_v19 = vpop.f32.mrb[48].mxu1  ;;  %1210 = vmax.xlane.f32.xlu1 %v1209_v16  ;;  %v1212_v20 = vsel %vm1127_vm8, %v2524_v14, -inf }
 0x2ce   :  { %v2534_v21 = vadd.f32 %v1907_v19, %v2383_v44  ;;  %v1118_v22 = vpop.f32.mrb[49].mxu1  ;;  %1213 = vmax.xlane.f32.xlu0 %v1212_v20 }
 0x2cf   :  { %v2537_v25 = vadd.f32 %v2383_v44, %v1118_v22 }
 0x2d0   :  { %v1221_v28 = vsel %vm1127_vm8, %v2534_v21, -inf }
 0x2d1   :  { %1216 = vmax.xlane.f32.xlu1 %v1215_v26  ;;  %v1218_v27 = vsel %vm1127_vm8, %v2537_v25, -inf }
 0x2d2   :  { %1219 = vmax.xlane.f32.xlu0 %v1218_v27 }
 0x2d5   :  { %1222 = vmax.xlane.f32.xlu1 %v1221_v28 }
 0x322   :  { %v1133_v31 = vpop.xlane.xlu0 %1132 }
 0x323   :  { %v2546_v32 = vsub.f32 %v2386_v46, %v1133_v31 }
 0x325   :  { %v1258_v33 = vmul.f32 1.442695, %v2546_v32 }
 0x326   :  { %v1139_v44 = vpop.xlane.xlu1 %1138  ;;  %v1130_v34 = vpop.xlane.xlu0 %1129 }
 0x327   :  { %1921 = vpow2.f32 %v1258_v33  ;;  %v2550_v37 = vsub.f32 %v2394_v50, %v1139_v44  ;;  %v2553_v38 = vsub.f32 %v2389_v47, %v1130_v34 }
 0x329   :  { %v1262_v41 = vmul.f32 1.442695, %v2550_v37  ;;  %v1256_v42 = vmul.f32 1.442695, %v2553_v38 }
 0x32a   :  { %v1136_v45 = vpop.xlane.xlu1 %1135 }
 0x32b   :  { %1923 = vpow2.f32 %v1262_v41  ;;  %v2558_v46 = vsub.f32 %v2397_v52, %v1136_v45  ;;  %v1142_v10 = vpop.xlane.xlu0 %1141 }
 0x32c   :  { %1925 = vpow2.f32 %v1256_v42  ;;  %v2561_v48 = vsub.f32 %v2404_v57, %v1142_v10 }
 0x32d   :  { %v1260_v50 = vmul.f32 1.442695, %v2558_v46 }
 0x32e   :  { %v1264_v49 = vmul.f32 1.442695, %v2561_v48  ;;  %v1145_v47 = vpop.xlane.xlu1 %1144 }
 0x32f   :  { %1927 = vpow2.f32 %v1260_v50  ;;  %v2566_v54 = vsub.f32 %v2407_v58, %v1145_v47  ;;  %v1148_v55 = vpop.xlane.xlu0 %1147 }
 0x330   :  { %v2569_v56 = vsub.f32 %v2414_v63, %v1148_v55  ;;  %1929 = vpow2.f32 %v1264_v49 }
 0x331   :  { %v1922_v52 = vpop.eup %1921  ;;  %v1266_v59 = vmul.f32 1.442695, %v2566_v54 }
 0x332   :  { %v1268_v57 = vmul.f32 1.442695, %v2569_v56  ;;  %v1151_v62 = vpop.xlane.xlu1 %1150  ;;  %v1323_v1 = vsel %vm1127_vm8, %v1922_v52, 0.0 }
 0x333   :  { %1931 = vpow2.f32 %v1266_v59  ;;  %v2575_v2 = vsub.f32 %v2417_v0, %v1151_v62  ;;  %1324 = vadd.xlane.f32.xlu1 %v1323_v1  ;;  %v1154_v58 = vpop.xlane.xlu0 %1153 }
 0x334   :  { %v2578_v3 = vsub.f32 %v2424_v5, %v1154_v58  ;;  %1933 = vpow2.f32 %v1268_v57 }
 0x335   :  { %v1924_v63 = vpop.eup %1923  ;;  %v1270_v8 = vmul.f32 1.442695, %v2575_v2 }
 0x336   :  { %v1926_v9 = vpop.eup %1925  ;;  %v1272_v11 = vmul.f32 1.442695, %v2578_v3  ;;  %v1157_v40 = vpop.xlane.xlu1 %1156  ;;  %v1329_v16 = vsel %vm1127_vm8, %v1924_v63, 0.0 }
 0x337   :  { %1935 = vpow2.f32 %v1270_v8  ;;  %v2584_v19 = vsub.f32 %v2427_v6, %v1157_v40  ;;  %1330 = vadd.xlane.f32.xlu1 %v1329_v16  ;;  %v1320_v0 = vsel %vm1127_vm8, %v1926_v9, 0.0  ;;  %v1160_v20 = vpop.xlane.xlu0 %1159 }
 0x338   :  { %1321 = vadd.xlane.f32.xlu0 %v1320_v0  ;;  %v2588_v5 = vsub.f32 %v2434_v12, %v1160_v20  ;;  %1937 = vpow2.f32 %v1272_v11 }
 0x339   :  { %v1928_v22 = vpop.eup %1927  ;;  %v1274_v26 = vmul.f32 1.442695, %v2584_v19 }
 0x33a   :  { %v1276_v27 = vmul.f32 1.442695, %v2588_v5  ;;  %v1163_v28 = vpop.xlane.xlu1 %1162  ;;  %v1326_v31 = vsel %vm1127_vm8, %v1928_v22, 0.0  ;;  %v1930_v44 = vpop.eup %1929 }
 0x33b   :  { %1939 = vpow2.f32 %v1274_v26  ;;  %v2594_v6 = vsub.f32 %v2437_v13, %v1163_v28  ;;  %v1166_v33 = vpop.xlane.xlu0 %1165  ;;  %v1332_v13 = vsel %vm1127_vm8, %v1930_v44, 0.0 }
 0x33c   :  { %1327 = vadd.xlane.f32.xlu0 %v1326_v31  ;;  %v2597_v34 = vsub.f32 %v2444_v17, %v1166_v33  ;;  %1941 = vpow2.f32 %v1276_v27 }
 0x33d   :  { %v1932_v12 = vpop.eup %1931  ;;  %v1278_v41 = vmul.f32 1.442695, %v2594_v6 }
 0x33e   :  { %v1280_v42 = vmul.f32 1.442695, %v2597_v34  ;;  %v1169_v45 = vpop.xlane.xlu1 %1168  ;;  %v1335_v10 = vsel %vm1127_vm8, %v1932_v12, 0.0  ;;  %v1934_v47 = vpop.eup %1933 }
 0x33f   :  { %1943 = vpow2.f32 %v1278_v41  ;;  %v2603_v50 = vsub.f32 %v2447_v18, %v1169_v45  ;;  %1336 = vadd.xlane.f32.xlu1 %v1335_v10  ;;  %v1172_v49 = vpop.xlane.xlu0 %1171  ;;  %v1338_v1 = vsel %vm1127_vm8, %v1934_v47, 0.0 }
 0x340   :  { %1333 = vadd.xlane.f32.xlu0 %v1332_v13  ;;  %v2607_v17 = vsub.f32 %v2454_v23, %v1172_v49  ;;  %1945 = vpow2.f32 %v1280_v42 }
 0x341   :  { %v1936_v55 = vpop.eup %1935  ;;  %v1282_v52 = vmul.f32 1.442695, %v2603_v50 }
 0x342   :  { %v1284_v59 = vmul.f32 1.442695, %v2607_v17  ;;  %v1175_v57 = vpop.xlane.xlu1 %1174  ;;  %v1341_v62 = vsel %vm1127_vm8, %v1936_v55, 0.0  ;;  %v1938_v63 = vpop.eup %1937 }
 0x343   :  { %1947 = vpow2.f32 %v1282_v52  ;;  %v2613_v18 = vsub.f32 %v2457_v24, %v1175_v57  ;;  %1342 = vadd.xlane.f32.xlu1 %v1341_v62  ;;  %v1178_v58 = vpop.xlane.xlu0 %1177  ;;  %v1344_v0 = vsel %vm1127_vm8, %v1938_v63, 0.0 }
 0x344   :  { %1339 = vadd.xlane.f32.xlu0 %v1338_v1  ;;  %v2617_v23 = vsub.f32 %v2464_v29, %v1178_v58  ;;  %1949 = vpow2.f32 %v1284_v59 }
 0x345   :  { %v1940_v8 = vpop.eup %1939  ;;  %v1286_v9 = vmul.f32 1.442695, %v2613_v18 }
 0x346   :  { %v1288_v11 = vmul.f32 1.442695, %v2617_v23  ;;  %v1181_v40 = vpop.xlane.xlu1 %1180  ;;  %v1347_v16 = vsel %vm1127_vm8, %v1940_v8, 0.0  ;;  %v1942_v22 = vpop.eup %1941 }
 0x347   :  { %1951 = vpow2.f32 %v1286_v9  ;;  %v2623_v24 = vsub.f32 %v2467_v30, %v1181_v40  ;;  %1348 = vadd.xlane.f32.xlu1 %v1347_v16  ;;  %v1184_v20 = vpop.xlane.xlu0 %1183  ;;  %v1350_v44 = vsel %vm1127_vm8, %v1942_v22, 0.0 }
 0x348   :  { %1345 = vadd.xlane.f32.xlu0 %v1344_v0  ;;  %v2627_v29 = vsub.f32 %v2474_v35, %v1184_v20  ;;  %1953 = vpow2.f32 %v1288_v11 }
 0x349   :  { %v1944_v26 = vpop.eup %1943  ;;  %v1290_v27 = vmul.f32 1.442695, %v2623_v24 }
 0x34a   :  { %v1292_v28 = vmul.f32 1.442695, %v2627_v29  ;;  %v1187_v31 = vpop.xlane.xlu1 %1186  ;;  %v1353_v33 = vsel %vm1127_vm8, %v1944_v26, 0.0  ;;  %v1946_v41 = vpop.eup %1945 }
 0x34b   :  { %1955 = vpow2.f32 %v1290_v27  ;;  %v2633_v30 = vsub.f32 %v2477_v36, %v1187_v31  ;;  %1354 = vadd.xlane.f32.xlu1 %v1353_v33  ;;  %v1190_v12 = vpop.xlane.xlu0 %1189  ;;  %v1356_v47 = vsel %vm1127_vm8, %v1946_v41, 0.0 }
 0x34c   :  { %1351 = vadd.xlane.f32.xlu0 %v1350_v44  ;;  %v2637_v35 = vsub.f32 %v2484_v39, %v1190_v12  ;;  %1957 = vpow2.f32 %v1292_v28 }
 0x34d   :  { %v1948_v42 = vpop.eup %1947  ;;  %v1294_v45 = vmul.f32 1.442695, %v2633_v30 }
 0x34e   :  { %v1296_v10 = vmul.f32 1.442695, %v2637_v35  ;;  %v1193_v13 = vpop.xlane.xlu1 %1192  ;;  %v1359_v49 = vsel %vm1127_vm8, %v1948_v42, 0.0  ;;  %v1950_v52 = vpop.eup %1949 }
 0x34f   :  { %1959 = vpow2.f32 %v1294_v45  ;;  %v2643_v36 = vsub.f32 %v2487_v43, %v1193_v13  ;;  %1360 = vadd.xlane.f32.xlu1 %v1359_v49  ;;  %v1196_v55 = vpop.xlane.xlu0 %1195  ;;  %v1362_v63 = vsel %vm1127_vm8, %v1950_v52, 0.0 }
 0x350   :  { %1357 = vadd.xlane.f32.xlu0 %v1356_v47  ;;  %v2647_v39 = vsub.f32 %v2494_v51, %v1196_v55  ;;  %1961 = vpow2.f32 %v1296_v10 }
 0x351   :  { %v1952_v59 = vpop.eup %1951  ;;  %v1298_v57 = vmul.f32 1.442695, %v2643_v36 }
 0x352   :  { %v1300_v62 = vmul.f32 1.442695, %v2647_v39  ;;  %v1199_v1 = vpop.xlane.xlu1 %1198  ;;  %v1365_v58 = vsel %vm1127_vm8, %v1952_v59, 0.0  ;;  %v1954_v9 = vpop.eup %1953 }
 0x353   :  { %1963 = vpow2.f32 %v1298_v57  ;;  %v2653_v43 = vsub.f32 %v2497_v53, %v1199_v1  ;;  %1366 = vadd.xlane.f32.xlu1 %v1365_v58  ;;  %v1202_v8 = vpop.xlane.xlu0 %1201  ;;  %v1368_v22 = vsel %vm1127_vm8, %v1954_v9, 0.0 }
 0x354   :  { %1363 = vadd.xlane.f32.xlu0 %v1362_v63  ;;  %v2657_v51 = vsub.f32 %v2504_v60, %v1202_v8  ;;  %1965 = vpow2.f32 %v1300_v62 }
 0x355   :  { %v1956_v11 = vpop.eup %1955  ;;  %v1302_v40 = vmul.f32 1.442695, %v2653_v43 }
 0x356   :  { %v1304_v16 = vmul.f32 1.442695, %v2657_v51  ;;  %v1205_v0 = vpop.xlane.xlu1 %1204  ;;  %v1371_v20 = vsel %vm1127_vm8, %v1956_v11, 0.0  ;;  %v1958_v27 = vpop.eup %1957 }
 0x357   :  { %1967 = vpow2.f32 %v1302_v40  ;;  %v2663_v53 = vsub.f32 %v2507_v61, %v1205_v0  ;;  %1372 = vadd.xlane.f32.xlu1 %v1371_v20  ;;  %v1208_v26 = vpop.xlane.xlu0 %1207  ;;  %v1374_v41 = vsel %vm1127_vm8, %v1958_v27, 0.0 }
 0x358   :  { %1369 = vadd.xlane.f32.xlu0 %v1368_v22  ;;  %v2667_v60 = vsub.f32 %v2514_v4, %v1208_v26  ;;  %1969 = vpow2.f32 %v1304_v16 }
 0x359   :  { %v1960_v28 = vpop.eup %1959  ;;  %v1306_v31 = vmul.f32 1.442695, %v2663_v53 }
 0x35a   :  { %v1308_v33 = vmul.f32 1.442695, %v2667_v60  ;;  %v1211_v44 = vpop.xlane.xlu1 %1210  ;;  %v1377_v12 = vsel %vm1127_vm8, %v1960_v28, 0.0  ;;  %v1962_v45 = vpop.eup %1961 }
 0x35b   :  { %1971 = vpow2.f32 %v1306_v31  ;;  %v2673_v61 = vsub.f32 %v2517_v7, %v1211_v44  ;;  %1378 = vadd.xlane.f32.xlu1 %v1377_v12  ;;  %v1214_v42 = vpop.xlane.xlu0 %1213  ;;  %v1380_v52 = vsel %vm1127_vm8, %v1962_v45, 0.0 }
 0x35c   :  { %1375 = vadd.xlane.f32.xlu0 %v1374_v41  ;;  %v2677_v4 = vsub.f32 %v2524_v14, %v1214_v42  ;;  %1973 = vpow2.f32 %v1308_v33 }
 0x35d   :  { %v1964_v10 = vpop.eup %1963  ;;  %v1310_v13 = vmul.f32 1.442695, %v2673_v61 }
 0x35e   :  { %v1312_v49 = vmul.f32 1.442695, %v2677_v4  ;;  %v1217_v47 = vpop.xlane.xlu1 %1216  ;;  %v1383_v55 = vsel %vm1127_vm8, %v1964_v10, 0.0  ;;  %v1966_v57 = vpop.eup %1965 }
 0x35f   :  { %1975 = vpow2.f32 %v1310_v13  ;;  %v2683_v7 = vsub.f32 %v2527_v15, %v1217_v47  ;;  %1384 = vadd.xlane.f32.xlu1 %v1383_v55  ;;  %v1220_v59 = vpop.xlane.xlu0 %1219  ;;  %v1386_v9 = vsel %vm1127_vm8, %v1966_v57, 0.0 }
 0x360   :  { %1381 = vadd.xlane.f32.xlu0 %v1380_v52  ;;  %v2687_v14 = vsub.f32 %v2537_v25, %v1220_v59  ;;  %1977 = vpow2.f32 %v1312_v49 }
 0x361   :  { %v1968_v62 = vpop.eup %1967  ;;  %v1314_v1 = vmul.f32 1.442695, %v2683_v7 }
 0x362   :  { %v1316_v58 = vmul.f32 1.442695, %v2687_v14  ;;  %v1223_v63 = vpop.xlane.xlu1 %1222  ;;  %v1389_v8 = vsel %vm1127_vm8, %v1968_v62, 0.0  ;;  %v1970_v11 = vpop.eup %1969 }
 0x363   :  { %1979 = vpow2.f32 %v1314_v1  ;;  %v2693_v15 = vsub.f32 %v2534_v21, %v1223_v63  ;;  %1390 = vadd.xlane.f32.xlu1 %v1389_v8  ;;  %v1392_v0 = vsel %vm1127_vm8, %v1970_v11, 0.0 }
 0x364   :  { %1387 = vadd.xlane.f32.xlu0 %v1386_v9  ;;  %1981 = vpow2.f32 %v1316_v58 }
 0x365   :  { %v1972_v25 = vpop.eup %1971  ;;  %v1318_v40 = vmul.f32 1.442695, %v2693_v15 }
 0x366   :  { %v1395_v16 = vsel %vm1127_vm8, %v1972_v25, 0.0  ;;  %v1974_v20 = vpop.eup %1973 }
 0x367   :  { %1983 = vpow2.f32 %v1318_v40  ;;  %1396 = vadd.xlane.f32.xlu1 %v1395_v16  ;;  %v1398_v26 = vsel %vm1127_vm8, %v1974_v20, 0.0 }
 0x368   :  { %1393 = vadd.xlane.f32.xlu0 %v1392_v0 }
 0x369   :  { %v1976_v22 = vpop.eup %1975 }
 0x36a   :  { %v1401_v21 = vsel %vm1127_vm8, %v1976_v22, 0.0  ;;  %v1978_v27 = vpop.eup %1977 }
 0x36b   :  { %1402 = vadd.xlane.f32.xlu1 %v1401_v21  ;;  %v1404_v33 = vsel %vm1127_vm8, %v1978_v27, 0.0 }
 0x36c   :  { %1399 = vadd.xlane.f32.xlu0 %v1398_v26 }
 0x36d   :  { %v1980_v28 = vpop.eup %1979 }
 0x36e   :  { %v1407_v31 = vsel %vm1127_vm8, %v1980_v28, 0.0  ;;  %v1982_v44 = vpop.eup %1981 }
 0x36f   :  { %1408 = vadd.xlane.f32.xlu1 %v1407_v31  ;;  %v1410_v42 = vsel %vm1127_vm8, %v1982_v44, 0.0 }
 0x370   :  { %1405 = vadd.xlane.f32.xlu0 %v1404_v33 }
 0x371   :  { %v1984_v12 = vpop.eup %1983 }
 0x372   :  { %v1413_v41 = vsel %vm1127_vm8, %v1984_v12, 0.0 }
 0x373   :  { %1414 = vadd.xlane.f32.xlu1 %v1413_v41 }
 0x374   :  { %1411 = vadd.xlane.f32.xlu0 %v1410_v42 }
 0x3c0   :  { %v1325_v45 = vpop.xlane.xlu1 %1324 }
 0x3c1   :  { %1985 = vlog2.f32 %v1325_v45 }
 0x3c4   :  { %v1331_v10 = vpop.xlane.xlu1 %1330 }
 0x3c5   :  { %1987 = vlog2.f32 %v1331_v10  ;;  %v1322_v13 = vpop.xlane.xlu0 %1321 }
 0x3c6   :  { %1989 = vlog2.f32 %v1322_v13 }
 0x3c9   :  { %v1328_v49 = vpop.xlane.xlu0 %1327 }
 0x3ca   :  { %1991 = vlog2.f32 %v1328_v49 }
 0x3cb   :  { %v1986_v47 = vpop.eup %1985 }
 0x3cc   :  { %v1419_v55 = vmul.f32 0.6931472, %v1986_v47  ;;  %v1337_v52 = vpop.xlane.xlu1 %1336 }
 0x3cd   :  { %1993 = vlog2.f32 %v1337_v52  ;;  %v1334_v59 = vpop.xlane.xlu0 %1333 }
 0x3ce   :  { %v1481_v57 = vsub.f32 %v2546_v32, %v1419_v55  ;;  %1995 = vlog2.f32 %v1334_v59 }
 0x3cf   :  { %v1988_v62 = vpop.eup %1987 }
 0x3d0   :  { %v1990_v1 = vpop.eup %1989  ;;  %1513 = vst.msk [vmem:[%s2872_s7 + $0x8] sm:$0xff] %vm1127_vm8, %v1481_v57  ;;  %v1423_v58 = vmul.f32 0.6931472, %v1988_v62  ;;  %v1343_v63 = vpop.xlane.xlu1 %1342 }
 0x3d1   :  { %v1417_v8 = vmul.f32 0.6931472, %v1990_v1  ;;  %1997 = vlog2.f32 %v1343_v63  ;;  %v1340_v9 = vpop.xlane.xlu0 %1339 }
 0x3d2   :  { %v1483_v11 = vsub.f32 %v2550_v37, %v1423_v58  ;;  %1999 = vlog2.f32 %v1340_v9 }
 0x3d3   :  { %v1480_v25 = vsub.f32 %v2553_v38, %v1417_v8 }
 0x3d4   :  { %v1992_v40 = vpop.eup %1991  ;;  %1515 = vst.msk [vmem:[%s2872_s7 + $0x18] sm:$0xff] %vm1127_vm8, %v1483_v11  ;;  %v1349_v32 = vpop.xlane.xlu1 %1348 }
 0x3d5   :  { %1512 = vst.msk [vmem:[%s2872_s7] sm:$0xff] %vm1127_vm8, %v1480_v25  ;;  %v1421_v16 = vmul.f32 0.6931472, %v1992_v40  ;;  %2001 = vlog2.f32 %v1349_v32  ;;  %v1346_v0 = vpop.xlane.xlu0 %1345 }
 0x3d6   :  { %2003 = vlog2.f32 %v1346_v0 }
 0x3d7   :  { %v1994_v37 = vpop.eup %1993  ;;  %v1482_v20 = vsub.f32 %v2558_v46, %v1421_v16 }
 0x3d8   :  { %v1996_v38 = vpop.eup %1995  ;;  %v1427_v22 = vmul.f32 0.6931472, %v1994_v37  ;;  %v1355_v21 = vpop.xlane.xlu1 %1354 }
 0x3d9   :  { %1514 = vst.msk [vmem:[%s2872_s7 + $0x10] sm:$0xff] %vm1127_vm8, %v1482_v20  ;;  %v1425_v26 = vmul.f32 0.6931472, %v1996_v38  ;;  %2005 = vlog2.f32 %v1355_v21  ;;  %v1352_v27 = vpop.xlane.xlu0 %1351 }
 0x3da   :  { %v1485_v28 = vsub.f32 %v2566_v54, %v1427_v22  ;;  %2007 = vlog2.f32 %v1352_v27 }
 0x3db   :  { %v1998_v31 = vpop.eup %1997  ;;  %v1484_v33 = vsub.f32 %v2561_v48, %v1425_v26 }
 0x3dc   :  { %v2000_v44 = vpop.eup %1999  ;;  %1517 = vst.msk [vmem:[%s2872_s7 + $0x28] sm:$0xff] %vm1127_vm8, %v1485_v28  ;;  %v1431_v46 = vmul.f32 0.6931472, %v1998_v31  ;;  %v1361_v12 = vpop.xlane.xlu1 %1360 }
 0x3dd   :  { %1516 = vst.msk [vmem:[%s2872_s7 + $0x20] sm:$0xff] %vm1127_vm8, %v1484_v33  ;;  %v1429_v41 = vmul.f32 0.6931472, %v2000_v44  ;;  %2009 = vlog2.f32 %v1361_v12  ;;  %v1358_v54 = vpop.xlane.xlu0 %1357 }
 0x3de   :  { %v1487_v42 = vsub.f32 %v2575_v2, %v1431_v46  ;;  %2011 = vlog2.f32 %v1358_v54 }
 0x3df   :  { %v2002_v48 = vpop.eup %2001  ;;  %v1486_v45 = vsub.f32 %v2569_v56, %v1429_v41 }
 0x3e0   :  { %v2004_v10 = vpop.eup %2003  ;;  %1519 = vst.msk [vmem:[%s2872_s7 + $0x38] sm:$0xff] %vm1127_vm8, %v1487_v42  ;;  %v1435_v13 = vmul.f32 0.6931472, %v2002_v48  ;;  %v1367_v49 = vpop.xlane.xlu1 %1366 }
 0x3e1   :  { %1518 = vst.msk [vmem:[%s2872_s7 + $0x30] sm:$0xff] %vm1127_vm8, %v1486_v45  ;;  %v1433_v47 = vmul.f32 0.6931472, %v2004_v10  ;;  %2013 = vlog2.f32 %v1367_v49  ;;  %v1364_v2 = vpop.xlane.xlu0 %1363 }
 0x3e2   :  { %v1489_v55 = vsub.f32 %v2584_v19, %v1435_v13  ;;  %2015 = vlog2.f32 %v1364_v2 }
 0x3e3   :  { %v2006_v56 = vpop.eup %2005  ;;  %v1488_v52 = vsub.f32 %v2578_v3, %v1433_v47 }
 0x3e4   :  { %v2008_v59 = vpop.eup %2007  ;;  %1521 = vst.msk [vmem:[%s2872_s7 + $0x48] sm:$0xff] %vm1127_vm8, %v1489_v55  ;;  %v1439_v57 = vmul.f32 0.6931472, %v2006_v56  ;;  %v1373_v62 = vpop.xlane.xlu1 %1372 }
 0x3e5   :  { %1520 = vst.msk [vmem:[%s2872_s7 + $0x40] sm:$0xff] %vm1127_vm8, %v1488_v52  ;;  %v1437_v1 = vmul.f32 0.6931472, %v2008_v59  ;;  %2017 = vlog2.f32 %v1373_v62  ;;  %v1370_v19 = vpop.xlane.xlu0 %1369 }
 0x3e6   :  { %v1491_v58 = vsub.f32 %v2594_v6, %v1439_v57  ;;  %2019 = vlog2.f32 %v1370_v19 }
 0x3e7   :  { %v2010_v3 = vpop.eup %2009  ;;  %v1490_v63 = vsub.f32 %v2588_v5, %v1437_v1 }
 0x3e8   :  { %v2012_v8 = vpop.eup %2011  ;;  %1523 = vst.msk [vmem:[%s2872_s7 + $0x58] sm:$0xff] %vm1127_vm8, %v1491_v58  ;;  %v1443_v9 = vmul.f32 0.6931472, %v2010_v3  ;;  %v1379_v11 = vpop.xlane.xlu1 %1378 }
 0x3e9   :  { %1522 = vst.msk [vmem:[%s2872_s7 + $0x50] sm:$0xff] %vm1127_vm8, %v1490_v63  ;;  %v1441_v25 = vmul.f32 0.6931472, %v2012_v8  ;;  %2021 = vlog2.f32 %v1379_v11  ;;  %v1376_v6 = vpop.xlane.xlu0 %1375 }
 0x3ea   :  { %v1493_v40 = vsub.f32 %v2603_v50, %v1443_v9  ;;  %2023 = vlog2.f32 %v1376_v6 }
 0x3eb   :  { %v2014_v5 = vpop.eup %2013  ;;  %v1492_v32 = vsub.f32 %v2597_v34, %v1441_v25 }
 0x3ec   :  { %v2016_v16 = vpop.eup %2015  ;;  %1525 = vst.msk [vmem:[%s2872_s7 + $0x68] sm:$0xff] %vm1127_vm8, %v1493_v40  ;;  %v1447_v0 = vmul.f32 0.6931472, %v2014_v5  ;;  %v1385_v37 = vpop.xlane.xlu1 %1384 }
 0x3ed   :  { %1524 = vst.msk [vmem:[%s2872_s7 + $0x60] sm:$0xff] %vm1127_vm8, %v1492_v32  ;;  %v1445_v20 = vmul.f32 0.6931472, %v2016_v16  ;;  %2025 = vlog2.f32 %v1385_v37  ;;  %v1382_v50 = vpop.xlane.xlu0 %1381 }
 0x3ee   :  { %v1495_v38 = vsub.f32 %v2613_v18, %v1447_v0  ;;  %2027 = vlog2.f32 %v1382_v50 }
 0x3ef   :  { %v2018_v34 = vpop.eup %2017  ;;  %v1494_v22 = vsub.f32 %v2607_v17, %v1445_v20 }
 0x3f0   :  { %v2020_v21 = vpop.eup %2019  ;;  %1527 = vst.msk [vmem:[%s2872_s7 + $0x78] sm:$0xff] %vm1127_vm8, %v1495_v38  ;;  %v1451_v26 = vmul.f32 0.6931472, %v2018_v34  ;;  %v1391_v27 = vpop.xlane.xlu1 %1390 }
 0x3f1   :  { %1526 = vst.msk [vmem:[%s2872_s7 + $0x70] sm:$0xff] %vm1127_vm8, %v1494_v22  ;;  %v1449_v28 = vmul.f32 0.6931472, %v2020_v21  ;;  %2029 = vlog2.f32 %v1391_v27  ;;  %v1388_v18 = vpop.xlane.xlu0 %1387 }
 0x3f2   :  { %v1497_v31 = vsub.f32 %v2623_v24, %v1451_v26  ;;  %2031 = vlog2.f32 %v1388_v18 }
 0x3f3   :  { %v2022_v17 = vpop.eup %2021  ;;  %v1496_v33 = vsub.f32 %v2617_v23, %v1449_v28 }
 0x3f4   :  { %v2024_v44 = vpop.eup %2023  ;;  %1529 = vst.msk [vmem:[%s2872_s7 + $0x88] sm:$0xff] %vm1127_vm8, %v1497_v31  ;;  %v1455_v46 = vmul.f32 0.6931472, %v2022_v17  ;;  %v1397_v12 = vpop.xlane.xlu1 %1396 }
 0x3f5   :  { %1528 = vst.msk [vmem:[%s2872_s7 + $0x80] sm:$0xff] %vm1127_vm8, %v1496_v33  ;;  %v1453_v41 = vmul.f32 0.6931472, %v2024_v44  ;;  %2033 = vlog2.f32 %v1397_v12  ;;  %v1394_v24 = vpop.xlane.xlu0 %1393 }
 0x3f6   :  { %v1499_v54 = vsub.f32 %v2633_v30, %v1455_v46  ;;  %2035 = vlog2.f32 %v1394_v24 }
 0x3f7   :  { %v2026_v23 = vpop.eup %2025  ;;  %v1498_v42 = vsub.f32 %v2627_v29, %v1453_v41 }
 0x3f8   :  { %v2028_v48 = vpop.eup %2027  ;;  %1531 = vst.msk [vmem:[%s2872_s7 + $0x98] sm:$0xff] %vm1127_vm8, %v1499_v54  ;;  %v1459_v45 = vmul.f32 0.6931472, %v2026_v23  ;;  %v1403_v10 = vpop.xlane.xlu1 %1402 }
 0x3f9   :  { %1530 = vst.msk [vmem:[%s2872_s7 + $0x90] sm:$0xff] %vm1127_vm8, %v1498_v42  ;;  %v1457_v13 = vmul.f32 0.6931472, %v2028_v48  ;;  %2037 = vlog2.f32 %v1403_v10  ;;  %v1400_v30 = vpop.xlane.xlu0 %1399 }
 0x3fa   :  { %v1501_v49 = vsub.f32 %v2643_v36, %v1459_v45  ;;  %2039 = vlog2.f32 %v1400_v30 }
 0x3fb   :  { %v2030_v29 = vpop.eup %2029  ;;  %v1500_v47 = vsub.f32 %v2637_v35, %v1457_v13 }
 0x3fc   :  { %v2032_v2 = vpop.eup %2031  ;;  %1533 = vst.msk [vmem:[%s2872_s7 + $0xa8] sm:$0xff] %vm1127_vm8, %v1501_v49  ;;  %v1463_v55 = vmul.f32 0.6931472, %v2030_v29  ;;  %v1409_v56 = vpop.xlane.xlu1 %1408 }
 0x3fd   :  { %1532 = vst.msk [vmem:[%s2872_s7 + $0xa0] sm:$0xff] %vm1127_vm8, %v1500_v47  ;;  %v1461_v52 = vmul.f32 0.6931472, %v2032_v2  ;;  %2041 = vlog2.f32 %v1409_v56  ;;  %v1406_v36 = vpop.xlane.xlu0 %1405 }
 0x3fe   :  { %v1503_v59 = vsub.f32 %v2653_v43, %v1463_v55  ;;  %2043 = vlog2.f32 %v1406_v36 }
 0x3ff   :  { %v2034_v35 = vpop.eup %2033  ;;  %v1502_v57 = vsub.f32 %v2647_v39, %v1461_v52 }
 0x400   :  { %v2036_v62 = vpop.eup %2035  ;;  %1535 = vst.msk [vmem:[%s2872_s7 + $0xb8] sm:$0xff] %vm1127_vm8, %v1503_v59  ;;  %v1467_v1 = vmul.f32 0.6931472, %v2034_v35  ;;  %v1415_v19 = vpop.xlane.xlu1 %1414 }
 0x401   :  { %1534 = vst.msk [vmem:[%s2872_s7 + $0xb0] sm:$0xff] %vm1127_vm8, %v1502_v57  ;;  %v1465_v58 = vmul.f32 0.6931472, %v2036_v62  ;;  %2045 = vlog2.f32 %v1415_v19  ;;  %v1412_v43 = vpop.xlane.xlu0 %1411 }
 0x402   :  { %v1505_v3 = vsub.f32 %v2663_v53, %v1467_v1  ;;  %2047 = vlog2.f32 %v1412_v43 }
 0x403   :  { %v2038_v39 = vpop.eup %2037  ;;  %v1504_v63 = vsub.f32 %v2657_v51, %v1465_v58 }
 0x404   :  { %v2040_v8 = vpop.eup %2039  ;;  %1537 = vst.msk [vmem:[%s2872_s7 + $0xc8] sm:$0xff] %vm1127_vm8, %v1505_v3  ;;  %v1471_v9 = vmul.f32 0.6931472, %v2038_v39 }
 0x405   :  { %1536 = vst.msk [vmem:[%s2872_s7 + $0xc0] sm:$0xff] %vm1127_vm8, %v1504_v63  ;;  %v1469_v11 = vmul.f32 0.6931472, %v2040_v8 }
 0x406   :  { %v1507_v25 = vsub.f32 %v2673_v61, %v1471_v9 }
 0x407   :  { %v2042_v53 = vpop.eup %2041  ;;  %v1506_v6 = vsub.f32 %v2667_v60, %v1469_v11 }
 0x408   :  { %v2044_v40 = vpop.eup %2043  ;;  %1539 = vst.msk [vmem:[%s2872_s7 + $0xd8] sm:$0xff] %vm1127_vm8, %v1507_v25  ;;  %v1475_v51 = vmul.f32 0.6931472, %v2042_v53 }
 0x409   :  { %1538 = vst.msk [vmem:[%s2872_s7 + $0xd0] sm:$0xff] %vm1127_vm8, %v1506_v6  ;;  %v1473_v5 = vmul.f32 0.6931472, %v2044_v40 }
 0x40a   :  { %v1509_v32 = vsub.f32 %v2683_v7, %v1475_v51 }
 0x40b   :  { %v2046_v16 = vpop.eup %2045  ;;  %v1508_v61 = vsub.f32 %v2677_v4, %v1473_v5 }
 0x40c   :  { %v2048_v0 = vpop.eup %2047  ;;  %1541 = vst.msk [vmem:[%s2872_s7 + $0xe8] sm:$0xff] %vm1127_vm8, %v1509_v32  ;;  %v1479_v60 = vmul.f32 0.6931472, %v2046_v16 }
 0x40d   :  { %1540 = vst.msk [vmem:[%s2872_s7 + $0xe0] sm:$0xff] %vm1127_vm8, %v1508_v61  ;;  %v1477_v37 = vmul.f32 0.6931472, %v2048_v0 }
 0x40e   :  { %v1511_v20 = vsub.f32 %v2693_v15, %v1479_v60 }
 0x40f   :  { %v1510_v7 = vsub.f32 %v2687_v14, %v1477_v37 }
 0x410   :  { %1543 = vst.msk [vmem:[%s2872_s7 + $0xf8] sm:$0xff] %vm1127_vm8, %v1511_v20 }
 0x411   :  { %1542 = vst.msk [vmem:[%s2872_s7 + $0xf0] sm:$0xff] %vm1127_vm8, %v1510_v7 }

</bundles_post_ra>
